<compile_context>
chip_gen: v7x
topology: tpu7x:2x2x1
jax: 0.10.0
libtpu: 0.0.40
codegen_flags: <defaults>
</compile_context>

<pallas_src>
import functools

import jax
import jax.numpy as jnp
from jax.experimental import pallas as pl
from jax.experimental.pallas import tpu as pltpu


def _cdiv(a, b):
    return -(-a // b)


def _vmem_capacity_bytes():
    try:
        return int(pltpu.get_tpu_info().vmem_capacity_bytes)
    except Exception:
        return 64 * 1024 * 1024          # conservative (v7x per-TC VMEM)


def _conv_prelu_kernel(x_ref, w_ref, b_ref, a_ref, o_ref, acc_ref, *scratch,
                       KH, KW, stride, OW, TOH, C):
    """Fused direct conv + bias + per-channel PReLU for one (image, O-tile, M-tile).

    x_ref   : (1, s*s, PH, PW, C) bf16   phase-decomposed zero-padded activation
    w_ref   : (KH, KW*C, TON)     bf16   weight (kh-major, (kw,c) contraction, O minor)
    b_ref   : (1, TON)            f32    bias
    a_ref   : (1, TON)            f32    PReLU slopes
    o_ref   : (1, TM, TON)        f32    output rows of this M-tile (TM = TOH*OW)
    acc_ref : (TM, TON)           f32    VMEM scratch accumulator
    scratch : optional (TM, KW*C) bf16   VMEM slab (only when KW > 1)
    """
    s = stride
    TM = TOH * OW
    slab_ref = scratch[0] if scratch else None
    oh0 = pl.program_id(2) * TOH              # first output row of this M-tile

    for kh in range(KH):
        ph, dh = kh % s, kh // s
        if KW == 1:
            # 1-wide kernel: PW == OW, the slice is contiguous, no slab needed.
            xs = x_ref[0, ph * s, pl.ds(dh + oh0, TOH), :, :]
            lhs = xs.reshape(TM, C)
        else:
            # Build the (TM, KW*C) LHS slab for this kh: one contiguous-in-O
            # matmul covers all KW taps at once.
            for kw in range(KW):
                pw, dw = kw % s, kw // s
                xs = x_ref[0, ph * s + pw, pl.ds(dh + oh0, TOH), pl.ds(dw, OW), :]
                slab_ref[:, kw * C:(kw + 1) * C] = xs.reshape(TM, C)
            lhs = slab_ref[...]

        contrib = jnp.dot(lhs, w_ref[kh], preferred_element_type=jnp.float32)
        if kh == 0:
            acc_ref[...] = contrib
        else:
            acc_ref[...] += contrib           # MRB-friendly in-place accumulation

    acc = acc_ref[...] + b_ref[...]           # (1, TON) broadcast over rows
    o_ref[0] = jnp.where(acc > 0.0, acc, a_ref[...] * acc).astype(o_ref.dtype)


def conv_prelu(x, weight, bias, alpha, *, stride=1, padding=0):
    """Conv2d(in, out, k, stride, padding, groups=1, bias=True) -> PReLU(out).

    x      : (N, C, H, W)    float32 (NCHW as in PyTorch)
    weight : (O, C, KH, KW)  float32
    bias   : (O,)            float32
    alpha  : (O,)            float32 (PReLU per-channel slope)
    returns: (N, O, OH, OW)  float32
    """
    N, C, H, W = x.shape
    O, Cw, KH, KW = weight.shape
    assert Cw == C  # TODO(synk): grouped conv (groups > 1, e.g. depthwise) not implemented; module default is groups=1
    s, p = stride, padding
    OH = (H + 2 * p - KH) // s + 1
    OW = (W + 2 * p - KW) // s + 1

    # ---- phase (space-to-depth) decomposition: every kernel tap becomes a
    # contiguous in-kernel slice for ANY stride (stride==1 is a pure reshape). ----
    DH, DW = _cdiv(KH, s), _cdiv(KW, s)
    PH, PW = OH + DH - 1, OW + DW - 1
    HT, WT = s * PH, s * PW

    xb = x.astype(jnp.bfloat16).transpose(0, 2, 3, 1)          # NHWC, bf16
    xb = jnp.pad(xb, ((0, 0),
                      (p, max(0, HT - H - p)),
                      (p, max(0, WT - W - p)),
                      (0, 0)))[:, :HT, :WT, :]
    if s == 1:
        xph = xb.reshape(N, 1, PH, PW, C)                      # no transpose needed
    else:
        xph = xb.reshape(N, PH, s, PW, s, C).transpose(0, 2, 4, 1, 3, 5)
        xph = xph.reshape(N, s * s, PH, PW, C)

    # ---- weight / bias / slope, lane-dense O (pad to multiple of 128),
    #      (kw, c) folded into the contraction axis ----
    Op = _cdiv(O, 128) * 128
    wt = weight.transpose(2, 3, 1, 0).astype(jnp.bfloat16)     # (KH, KW, C, O)
    wt = jnp.pad(wt, ((0, 0), (0, 0), (0, 0), (0, Op - O))).reshape(KH, KW * C, Op)
    b2 = jnp.pad(bias.astype(jnp.float32), (0, Op - O)).reshape(1, Op)
    a2 = jnp.pad(alpha.astype(jnp.float32), (0, Op - O)).reshape(1, Op)

    M = OH * OW

    # ---- chip-aware tile selection (VMEM budget from the actual device) ----
    vmem_cap = _vmem_capacity_bytes()
    budget = int(0.70 * vmem_cap)            # ~45 MiB on v7x, ~90 MiB on v5e/v6e

    def pad8(v):
        return _cdiv(v, 8) * 8

    def pad128(v):
        return _cdiv(v, 128) * 128

    x_blk = s * s * PH * pad8(PW) * pad128(C) * 2              # bf16, layout-padded

    def est(ton, tm):
        w_blk = KH * pad8(KW * C) * ton * 2
        o_blk = tm * ton * 4
        sc_blk = 2 * 8 * ton * 4                               # bias + alpha blocks
        slab = (pad8(tm) * pad128(KW * C) * 2) if KW > 1 else 0
        acc = tm * ton * 4
        return 2 * (x_blk + w_blk + o_blk + sc_blk) + slab + acc

    # O-tile candidates (descending; >=256 preferred for the 256-wide MXU).
    ton_cands = [c for c in (512, 256, 128) if c <= Op and Op % c == 0] or [128]
    # M-tile candidates: whole output rows, TM % 8 == 0, TM <= ~1024;
    # only tile when M is large enough for it to matter.
    if M <= 2048:
        toh_cands = [OH]
    else:
        toh_cands = [t for t in range(OH, 0, -1)
                     if OH % t == 0 and t * OW <= 1024 and (t * OW) % 8 == 0]
        toh_cands.append(OH)                                   # fallback: full image

    ton, TOH = ton_cands[-1], toh_cands[0]
    picked = False
    for tc in ton_cands:                                       # keep ton wide first,
        for th in toh_cands:                                   # shrink TM before ton
            if est(tc, th * OW) <= budget:
                ton, TOH = tc, th
                picked = True
                break
        if picked:
            break
    TM = TOH * OW
    need = est(ton, TM)
    vmem_limit = int(min(vmem_cap - 2 * 1024 * 1024,
                         max(32 * 1024 * 1024, int(1.4 * need))))
    vmem_limit = max(vmem_limit, 16 * 1024 * 1024)

    n_j = Op // ton
    n_m = M // TM

    # ---- grid order: hold the bigger operand resident, re-stream the smaller ----
    w_tile_bytes = KH * KW * C * ton * 2.0
    x_img_bytes = s * s * PH * PW * C * 2.0
    act_major = (N * (n_j - 1) * w_tile_bytes) <= (n_j * (N - 1) * x_img_bytes)

    if act_major:
        grid = (N, n_j, n_m)
        x_map = lambda n, j, m: (n, 0, 0, 0, 0)
        w_map = lambda n, j, m: (0, 0, j)
        v_map = lambda n, j, m: (0, j)
        o_map = lambda n, j, m: (n, m, j)
    else:
        grid = (n_j, N, n_m)
        x_map = lambda j, n, m: (n, 0, 0, 0, 0)
        w_map = lambda j, n, m: (0, 0, j)
        v_map = lambda j, n, m: (0, j)
        o_map = lambda j, n, m: (n, m, j)

    scratch_shapes = [pltpu.VMEM((TM, ton), jnp.float32)]
    if KW > 1:
        scratch_shapes.append(pltpu.VMEM((TM, KW * C), jnp.bfloat16))

    kernel = functools.partial(_conv_prelu_kernel, KH=KH, KW=KW, stride=s,
                               OW=OW, TOH=TOH, C=C)

    out = pl.pallas_call(
        kernel,
        out_shape=jax.ShapeDtypeStruct((N, M, Op), jnp.float32),
        grid_spec=pltpu.PrefetchScalarGridSpec(
            num_scalar_prefetch=0,
            grid=grid,
            in_specs=[
                pl.BlockSpec((1, s * s, PH, PW, C), x_map),
                pl.BlockSpec((KH, KW * C, ton), w_map),
                pl.BlockSpec((1, ton), v_map),
                pl.BlockSpec((1, ton), v_map),
            ],
            out_specs=pl.BlockSpec((1, TM, ton), o_map),
            scratch_shapes=scratch_shapes,
        ),
        compiler_params=pltpu.CompilerParams(
            dimension_semantics=("parallel", "parallel", "arbitrary"),
            vmem_limit_bytes=vmem_limit,
        ),
    )(xph, wt, b2, a2)

    # TODO(synk): in multi-layer use, keep activations in (N, OH*OW, Op)/NHWC
    # between convs to avoid these per-layer layout round trips.
    out = out[:, :, :O].reshape(N, OH, OW, O)
    return out.transpose(0, 3, 1, 2)            # back to NCHW (module contract)


def _reference(x, weight, bias, alpha, stride, padding):
    """Pure-JAX f32 reference matching PyTorch Conv2d + PReLU semantics."""
    y = jax.lax.conv_general_dilated(
        x, weight, window_strides=(stride, stride),
        padding=[(padding, padding), (padding, padding)],
        dimension_numbers=("NCHW", "OIHW", "NCHW"))
    y = y + bias[None, :, None, None]
    a = alpha[None, :, None, None]
    return jnp.where(y > 0, y, a * y)


if __name__ == "__main__":
    key = jax.random.PRNGKey(0)
    (kx, kw1, kb1, ka1, kw2, kb2, ka2, kx3, kw3, kb3, ka3,
     kx4, kw4, kb4, ka4, kx5, kw5, kb5, ka5) = jax.random.split(key, 19)

    # Tolerances loosened vs. the f32 reference because MXU operands are bf16
    # (f32 accumulation kept).
    ATOL = RTOL = 5e-2

    N, C_in, H, W = 2, 4, 16, 16
    x = jax.random.normal(kx, (N, C_in, H, W), dtype=jnp.float32)

    # Case 1: module defaults — Conv(in=4, out=8): 1x1, stride 1, pad 0.
    O1 = 8
    w1 = jax.random.uniform(kw1, (O1, C_in, 1, 1), jnp.float32, -0.5, 0.5)
    b1 = jax.random.uniform(kb1, (O1,), jnp.float32, -0.1, 0.1)
    a1 = jnp.full((O1,), 0.25, jnp.float32) + 0.01 * jax.random.normal(ka1, (O1,))
    y1 = conv_prelu(x, w1, b1, a1, stride=1, padding=0)
    jax.block_until_ready(y1)
    r1 = _reference(x, w1, b1, a1, 1, 0)
    assert y1.shape == (N, O1, H, W)
    assert jnp.allclose(y1, r1, atol=ATOL, rtol=RTOL), float(jnp.max(jnp.abs(y1 - r1)))

    # Case 2: Conv(in=4, out=16, kernel_size=3, stride=1, padding=1).
    O2 = 16
    w2 = jax.random.uniform(kw2, (O2, C_in, 3, 3), jnp.float32, -0.3, 0.3)
    b2 = jax.random.uniform(kb2, (O2,), jnp.float32, -0.1, 0.1)
    a2 = jnp.full((O2,), 0.25, jnp.float32) + 0.01 * jax.random.normal(ka2, (O2,))
    y2 = conv_prelu(x, w2, b2, a2, stride=1, padding=1)
    jax.block_until_ready(y2)
    r2 = _reference(x, w2, b2, a2, 1, 1)
    assert y2.shape == (N, O2, H, W)
    assert jnp.allclose(y2, r2, atol=ATOL, rtol=RTOL), float(jnp.max(jnp.abs(y2 - r2)))

    # Case 3: Conv(..., kernel_size=3, stride=2, padding=1) — strided pattern
    # used by the first layer of mbf (exercises the phase decomposition).
    O3 = 32
    x3 = jax.random.normal(kx3, (N, C_in, 32, 32), dtype=jnp.float32)
    w3 = jax.random.uniform(kw3, (O3, C_in, 3, 3), jnp.float32, -0.3, 0.3)
    b3 = jax.random.uniform(kb3, (O3,), jnp.float32, -0.1, 0.1)
    a3 = jnp.full((O3,), 0.25, jnp.float32) + 0.01 * jax.random.normal(ka3, (O3,))
    y3 = conv_prelu(x3, w3, b3, a3, stride=2, padding=1)
    jax.block_until_ready(y3)
    r3 = _reference(x3, w3, b3, a3, 2, 1)
    assert y3.shape == (N, O3, 16, 16)
    assert jnp.allclose(y3, r3, atol=ATOL, rtol=RTOL), float(jnp.max(jnp.abs(y3 - r3)))

    # Case 4: larger spatial extent — exercises the new output-row (M) tiling.
    O4, C4 = 8, 8
    x4 = jax.random.normal(kx4, (1, C4, 48, 48), dtype=jnp.float32)
    w4 = jax.random.uniform(kw4, (O4, C4, 3, 3), jnp.float32, -0.3, 0.3)
    b4 = jax.random.uniform(kb4, (O4,), jnp.float32, -0.1, 0.1)
    a4 = jnp.full((O4,), 0.25, jnp.float32) + 0.01 * jax.random.normal(ka4, (O4,))
    y4 = conv_prelu(x4, w4, b4, a4, stride=1, padding=1)
    jax.block_until_ready(y4)
    r4 = _reference(x4, w4, b4, a4, 1, 1)
    assert y4.shape == (1, O4, 48, 48)
    assert jnp.allclose(y4, r4, atol=ATOL, rtol=RTOL), float(jnp.max(jnp.abs(y4 - r4)))

    # Case 5: wide 1x1 pointwise conv (O > 128) — exercises multiple O tiles
    # and the weight-resident (O, N, M) grid ordering.
    O5, C5 = 640, 16
    x5 = jax.random.normal(kx5, (2, C5, 8, 8), dtype=jnp.float32)
    w5 = jax.random.uniform(kw5, (O5, C5, 1, 1), jnp.float32, -0.2, 0.2)
    b5 = jax.random.uniform(kb5, (O5,), jnp.float32, -0.1, 0.1)
    a5 = jnp.full((O5,), 0.25, jnp.float32) + 0.01 * jax.random.normal(ka5, (O5,))
    y5 = conv_prelu(x5, w5, b5, a5, stride=1, padding=0)
    jax.block_until_ready(y5)
    r5 = _reference(x5, w5, b5, a5, 1, 0)
    assert y5.shape == (2, O5, 8, 8)
    assert jnp.allclose(y5, r5, atol=ATOL, rtol=RTOL), float(jnp.max(jnp.abs(y5 - r5)))

    print("KERNEL_OK")
</pallas_src>

<mosaic_0001>
module attributes {stable_mosaic.version = 11 : i64} {
  func.func @_conv_prelu_kernel(%arg0: i32, %arg1: i32, %arg2: i32, %arg3: memref<1x1x16x16x4xbf16, #tpu.memory_space<vmem>>, %arg4: memref<1x4x128xbf16, #tpu.memory_space<vmem>>, %arg5: memref<1x128xf32, #tpu.memory_space<vmem>>, %arg6: memref<1x128xf32, #tpu.memory_space<vmem>>, %arg7: memref<1x256x128xf32, #tpu.memory_space<vmem>>, %arg8: memref<256x128xf32, #tpu.memory_space<vmem>>) attributes {dimension_semantics = [#tpu.dimension_semantics<parallel>, #tpu.dimension_semantics<parallel>, #tpu.dimension_semantics<arbitrary>], iteration_bounds = array<i64: 2, 1, 1>, scalar_prefetch = 0 : i64, scratch_operands = 1 : i64, tpu.core_type = #tpu.core_type<tc>, window_params = [{transform_indices = @transform_0, window_bounds = array<i64: 1, 1, 16, 16, 4>}, {transform_indices = @transform_1, window_bounds = array<i64: 1, 4, 128>}, {transform_indices = @transform_2, window_bounds = array<i64: 1, 128>}, {transform_indices = @transform_3, window_bounds = array<i64: 1, 128>}, {transform_indices = @transform_4, window_bounds = array<i64: 1, 256, 128>}]} {
    %c16_i32 = arith.constant 16 : i32
    %0 = arith.muli %arg2, %c16_i32 : i32
    %c0_i32 = arith.constant 0 : i32
    %1 = arith.addi %c0_i32, %0 : i32
    %c0 = arith.constant 0 : index
    %c0_0 = arith.constant 0 : index
    %2 = arith.index_cast %1 : i32 to index
    %c0_1 = arith.constant 0 : index
    %c0_2 = arith.constant 0 : index
    %3 = vector.load %arg3[%c0, %c0_0, %2, %c0_1, %c0_2] : memref<1x1x16x16x4xbf16, #tpu.memory_space<vmem>>, vector<1x1x16x16x4xbf16>
    %4 = vector.shape_cast %3 : vector<1x1x16x16x4xbf16> to vector<16x16x4xbf16>
    %5 = vector.shape_cast %4 : vector<16x16x4xbf16> to vector<256x4xbf16>
    %c0_3 = arith.constant 0 : index
    %c0_4 = arith.constant 0 : index
    %c0_5 = arith.constant 0 : index
    %6 = vector.load %arg4[%c0_3, %c0_4, %c0_5] : memref<1x4x128xbf16, #tpu.memory_space<vmem>>, vector<1x4x128xbf16>
    %7 = vector.shape_cast %6 : vector<1x4x128xbf16> to vector<4x128xbf16>
    %cst = arith.constant dense<0.000000e+00> : vector<256x128xf32>
    %8 = tpu.matmul %5, %7, %cst {dimension_numbers = #tpu.dot_dimension_numbers<[1], [0], [0], [1], [0, 0, 1, 1], [], []>} : vector<256x4xbf16>, vector<4x128xbf16>, vector<256x128xf32> -> vector<256x128xf32>
    %c0_6 = arith.constant 0 : index
    %c0_7 = arith.constant 0 : index
    %9 = vector.load %arg8[%c0_6, %c0_7] : memref<256x128xf32, #tpu.memory_space<vmem>>, vector<256x128xf32>
    tpu.vector_store %arg8[%c0_6, %c0_7], %8 {strides = array<i32>} : memref<256x128xf32, #tpu.memory_space<vmem>>, vector<256x128xf32>,
    %c0_8 = arith.constant 0 : index
    %c0_9 = arith.constant 0 : index
    %10 = vector.load %arg8[%c0_8, %c0_9] : memref<256x128xf32, #tpu.memory_space<vmem>>, vector<256x128xf32>
    %c0_10 = arith.constant 0 : index
    %c0_11 = arith.constant 0 : index
    %11 = vector.load %arg5[%c0_10, %c0_11] : memref<1x128xf32, #tpu.memory_space<vmem>>, vector<1x128xf32>
    %12 = vector.broadcast %11 : vector<1x128xf32> to vector<256x128xf32>
    %13 = arith.addf %10, %12 : vector<256x128xf32>
    %cst_12 = arith.constant 0.000000e+00 : f32
    %14 = vector.broadcast %cst_12 : f32 to vector<256x128xf32>
    %15 = arith.cmpf ogt, %13, %14 : vector<256x128xf32>
    %c0_13 = arith.constant 0 : index
    %c0_14 = arith.constant 0 : index
    %16 = vector.load %arg6[%c0_13, %c0_14] : memref<1x128xf32, #tpu.memory_space<vmem>>, vector<1x128xf32>
    %17 = vector.broadcast %16 : vector<1x128xf32> to vector<256x128xf32>
    %18 = arith.mulf %17, %13 : vector<256x128xf32>
    %19 = arith.select %15, %13, %18 : vector<256x128xi1>, vector<256x128xf32>
    %c0_15 = arith.constant 0 : index
    %c0_16 = arith.constant 0 : index
    %c0_17 = arith.constant 0 : index
    %20 = vector.load %arg7[%c0_15, %c0_16, %c0_17] : memref<1x256x128xf32, #tpu.memory_space<vmem>>, vector<1x256x128xf32>
    %21 = vector.shape_cast %20 : vector<1x256x128xf32> to vector<256x128xf32>
    %22 = vector.shape_cast %19 : vector<256x128xf32> to vector<1x256x128xf32>
    tpu.vector_store %arg7[%c0_15, %c0_16, %c0_17], %22 {strides = array<i32>} : memref<1x256x128xf32, #tpu.memory_space<vmem>>, vector<1x256x128xf32>,
    return
  }
  func.func @transform_0(%arg0: i32, %arg1: i32, %arg2: i32) -> (i32, i32, i32, i32, i32) {
    %c0_i32 = arith.constant 0 : i32
    %c0_i32_0 = arith.constant 0 : i32
    %c0_i32_1 = arith.constant 0 : i32
    %c0_i32_2 = arith.constant 0 : i32
    %c0_i32_3 = arith.constant 0 : i32
    return %arg0, %c0_i32, %c0_i32_0, %c0_i32_1, %c0_i32_2 : i32, i32, i32, i32, i32
  }
  func.func @transform_1(%arg0: i32, %arg1: i32, %arg2: i32) -> (i32, i32, i32) {
    %c0_i32 = arith.constant 0 : i32
    %c0_i32_0 = arith.constant 0 : i32
    %c0_i32_1 = arith.constant 0 : i32
    return %c0_i32, %c0_i32_0, %arg1 : i32, i32, i32
  }
  func.func @transform_2(%arg0: i32, %arg1: i32, %arg2: i32) -> (i32, i32) {
    %c0_i32 = arith.constant 0 : i32
    %c0_i32_0 = arith.constant 0 : i32
    return %c0_i32, %arg1 : i32, i32
  }
  func.func @transform_3(%arg0: i32, %arg1: i32, %arg2: i32) -> (i32, i32) {
    %c0_i32 = arith.constant 0 : i32
    %c0_i32_0 = arith.constant 0 : i32
    return %c0_i32, %arg1 : i32, i32
  }
  func.func @transform_4(%arg0: i32, %arg1: i32, %arg2: i32) -> (i32, i32, i32) {
    %c0_i32 = arith.constant 0 : i32
    return %arg0, %arg2, %arg1 : i32, i32, i32
  }
}

</mosaic_0001>

<bundles_post_ra>
// kernel: tpu_custom_call.1
= control target key start
LH: loop header
LB: loop body
LE: loop exit
PB: predicated region body
PF: predicated region fallthrough
CT: control target
= control target key end

     0   :  { %9 = vsyncpa [#allocation4], 0  ;;  %s1525_s0 = inlined_call_operand.vmem [shape: bf16[2,1,16,16,4], index: 0, kind: input, shape index: {}]   ;;  %s1526_s1 = inlined_call_operand.vmem [shape: bf16[1,4,128], index: 1, kind: input, shape index: {}]   ;;  %s1527_s2 = inlined_call_operand.vmem [shape: f32[1,128], index: 2, kind: input, shape index: {}]   ;;  %s1528_s3 = inlined_call_operand.vmem [shape: f32[1,128], index: 3, kind: input, shape index: {}]   ;;  %s1529_s4 = inlined_call_operand.hbm [shape: f32[2,256,128], index: 4, kind: output, shape index: {}]  }
   0x1   :  { %11 = vsyncpa [#allocation4 + $0x1], 0  ;;  %s1258_s15 = smov 0   ;;  %s1260_s16 = smov 0  }
   0x2   :  { %s1262_s17 = smov 0   ;;  %s1264_s18 = smov 0  }
   0x3   :  { %s1266_s19 = smov 0   ;;  %s1268_s20 = smov 0  }
   0x4 LB: > { %s970_s21 = sadd.s32 4294967295, %s1228_s20   ;;  %s971_s22 = sadd.s32 4294967294, %s1228_s20   ;;  %s1228_s20 = sphi %s1268_s20, %s17_s20   ;;  %s1224_s19 = sphi %s1266_s19, %s1536_s19   ;;  %s1220_s18 = sphi %s1264_s18, %s1535_s18   ;;  %s1216_s17 = sphi %s1262_s17, %s1534_s17   ;;  %s1212_s16 = sphi %s1260_s16, %s1533_s16   ;;  %s1208_s15 = sphi %s1258_s15, %s1532_s15  }
   0x5   : > { %s36_s23 = sadd.s32 1, %s1224_s19  ;;  %s151_s24 = sadd.s32 1, %s1216_s17 }
   0x6   : > { %p38_p0 = scmp.ge.s32.totalorder %s36_s23, 2  ;;  %p161_p1 = scmp.ne.s32.totalorder %s1216_s17, %s1212_s16 }
   0x7   : > { %p162_p2 = scmp.eq.s32.totalorder %s970_s21, 1  ;;  %p167_p3 = scmp.ne.s32.totalorder %s1212_s16, %s1208_s15 }
   0x8   : > { %s1538_s23 = smov (%p38_p0, %s36_s23), 0  ;;  %p168_p5 = scmp.eq.s32.totalorder %s971_s22, 1 }
   0x9   : > { %p1298_p4 = por %p162_p2, %p161_p1  ;;  %s144_s26 = ssub.s32 %s1224_s19, %s1538_s23 }
   0xa   : > { %p977_p6 = scmp.ge.s32.totalorder %s1228_s20, 1  ;;  %p149_p7 = scmp.eq.s32.totalorder %s144_s26, 0 }
   0xb   : > { %p1305_p8 = por %p168_p5, %p167_p3  ;;  %p213_p9 = scmp.lt.s32.totalorder %s1228_s20, 3 }
   0xc   : > { %s1311_s28 = scalar_select %p149_p7, %s1216_s17, %s151_s24  }
   0xd   : > { %p214_p10 = pnand %p977_p6, %p213_p9 }
   0xe   : > { %v302_v0 = vld [vmem:[%s1526_s1] sm:$0x3] (!%p214_p10)  ;;  %vm432_vm0 = vcmask (!%p214_p10), 1041408   ;;  %p249_p11 = scmp.lt.s32.totalorder (!%p214_p10), %s1220_s18, 1  ;;  %vm383_vm1 = vcmask (!%p214_p10), 31744   ;;  %s246_s10 = sand.u32 (!%p214_p10), 1, %s1212_s16  }
   0xf   : > { %217 = sbr.rel (%p214_p10) target bundleno = 291 (0x123), region = 36  ;;  %1075 = vmatprep.subr.msk.bf16.mxu0 (!%p214_p10), %vm432_vm0, %v302_v0  ;;  %1076 = vmatprep.subr.msk.bf16.mxu1 (!%p214_p10), %vm432_vm0, %v302_v0  ;;  %v434_v1 = vsel (!%p214_p10), %vm432_vm0, %v302_v0, 0  ;;  %v1359_v18 = vld [vmem:[%s1527_s2] ss:$0 sm:$0xff] (!%p214_p10)  ;;  %s978_s13 = sshll.u32 (!%p214_p10), %s246_s10, 8 }
  0x10   : > { %1040 = vmatpush3.bf16.msra.mxu0 (!%p214_p10), %v434_v1  ;;  %1074 = vmatpush3.bf16.msra.mxu1 (!%p214_p10), %v434_v1  ;;  %v1366_v20 = vld [vmem:[%s1528_s3] ss:$0 sm:$0xff] (!%p214_p10)  ;;  %s1377_s22 = scalar_lea.vmem (!%p214_p10), [#allocation3], %s978_s13  ;;  %s1021_s24 = sshll.u32 (!%p214_p10), %s1220_s18, 12 }
  0x11   : > { %s852_s26 = sshll.u32 (!%p214_p10), %s1377_s22, 4  ;;  %s1469_s30 = scalar_lea.hbm (!%p214_p10), %s1529_s4, %s1021_s24  ;;  %s1471_s26 = int_to_ptr.vmem [resolvable:$true] %s852_s26 }
  0x12   : > { %s1230_s7 = smov (!%p214_p10), [#allocation3]  }
  0x13   : > { %s1154_s8 = sshll.u32 (!%p214_p10), %s1230_s7, 4  ;;  %s1155_s8 = int_to_ptr.vmem [resolvable:$false] %s1154_s8 }
  0x14   : > { %p1157_p1 = scmp.lt.s32.totalorder (!%p214_p10), %s1471_s26, %s1155_s8 }
  0x16   : > { %s250_s5 = scalar_select %p249_p11, %s1220_s18, 1 }
  0x18   : > { %s1020_s6 = sshll.u32 %s250_s5, 7  ;;  %s1479_s5 = scalar_lea.sflag [#allocation4], %s246_s10 }
  0x19   : > { %s1321_s9 = scalar_lea.vmem %s1525_s0, %s1020_s6  ;;  %s1150_s6 = scalar_lea.vmem %s1471_s26, 4096 }
  0x1a   : > { %v1134_v2 = vld [vmem:[%s1321_s9] sm:$0xff]   ;;  %v1136_v4 = vld [vmem:[%s1321_s9 + $0x8] sm:$0xff]   ;;  %v1138_v6 = vld [vmem:[%s1321_s9 + $0x10] sm:$0xff]   ;;  %p1151_p12 = scmp.ne.s32.totalorder %s1471_s26, %s1150_s6 }
  0x1b   : > { %v1135_v3 = vld [vmem:[%s1321_s9 + $0x40] sm:$0xff]   ;;  %1041 = vmatprep.mubr.msk.bf16.mxu0 %vm383_vm1, %v1134_v2  ;;  %v1137_v5 = vld [vmem:[%s1321_s9 + $0x48] sm:$0xff]   ;;  %v1139_v7 = vld [vmem:[%s1321_s9 + $0x50] sm:$0xff]  }
  0x1c   : > { %1057 = vmatprep.mubr.msk.bf16.mxu1 %vm383_vm1, %v1135_v3  ;;  %1042 = vmatmul.mubr.msk.bf16.vlgmr.msra.gmra.mrb[0].mxu0 %vm383_vm1, %v1136_v4  ;;  %v1140_v8 = vld [vmem:[%s1321_s9 + $0x18] sm:$0xff]   ;;  %v1142_v10 = vld [vmem:[%s1321_s9 + $0x20] sm:$0xff]   ;;  %v1144_v12 = vld [vmem:[%s1321_s9 + $0x28] sm:$0xff]   ;;  %p1152_p13 = pnand %p1151_p12, %p1298_p4 }
  0x1d   : > { %1058 = vmatmul.mubr.msk.bf16.vlgmr.msra.gmra.mrb[0].mxu1 %vm383_vm1, %v1137_v5  ;;  %1045 = vmatprep.mubr.msk.bf16.mxu0 %vm383_vm1, %v1138_v6  ;;  %v1141_v9 = vld [vmem:[%s1321_s9 + $0x58] sm:$0xff]   ;;  %v1143_v11 = vld [vmem:[%s1321_s9 + $0x60] sm:$0xff]   ;;  %v1145_v13 = vld [vmem:[%s1321_s9 + $0x68] sm:$0xff]  }
  0x1e   : > { %1061 = vmatprep.mubr.msk.bf16.mxu1 %vm383_vm1, %v1139_v7  ;;  %v1146_v14 = vld [vmem:[%s1321_s9 + $0x30] sm:$0xff]   ;;  %v1148_v16 = vld [vmem:[%s1321_s9 + $0x38] sm:$0xff]   ;;  %p1153_p0 = pneg %p1152_p13 }
  0x1f   : > { %v1147_v15 = vld [vmem:[%s1321_s9 + $0x70] sm:$0xff]   ;;  %v1149_v17 = vld [vmem:[%s1321_s9 + $0x78] sm:$0xff]   ;;  %s1156_s9 = scalar_lea.vmem %s1155_s8, 8192 }
  0x20   : > { %p1158_p2 = scmp.lt.s32.totalorder %s1156_s9, %s1150_s6 }
  0x22   : > { %p1159_p3 = por %p1158_p2, %p1157_p1 }
  0x24   : > { %1046 = vmatmul.mubr.msk.bf16.gmra.mrb[4].mxu0 %vm383_vm1, %v1140_v8  ;;  %p1160_p5 = pnand %p1159_p3, %p1153_p0 }
  0x25   : > { %1062 = vmatmul.mubr.msk.bf16.gmra.mrb[4].mxu1 %vm383_vm1, %v1141_v9  ;;  %1049 = vmatprep.mubr.msk.bf16.mxu0 %vm383_vm1, %v1142_v10 }
  0x26   : > { %1065 = vmatprep.mubr.msk.bf16.mxu1 %vm383_vm1, %v1143_v11 }
  0x2c   : > { %1050 = vmatmul.mubr.msk.bf16.gmra.mrb[8].mxu0 %vm383_vm1, %v1144_v12 }
  0x2d   : > { %1066 = vmatmul.mubr.msk.bf16.gmra.mrb[8].mxu1 %vm383_vm1, %v1145_v13  ;;  %1053 = vmatprep.mubr.msk.bf16.mxu0 %vm383_vm1, %v1146_v14 }
  0x2e   : > { %1069 = vmatprep.mubr.msk.bf16.mxu1 %vm383_vm1, %v1147_v15 }
  0x34   : > { %1054 = vmatmul.mubr.msk.bf16.gmra.mrb[12].mxu0 %vm383_vm1, %v1148_v16 }
  0x35   : > { %1070 = vmatmul.mubr.msk.bf16.gmra.mrb[12].mxu1 %vm383_vm1, %v1149_v17 }
  0xef   : > { %v1043_v19 = vpop.f32.mrb[0].mxu0 }
  0xf0   : > { %v670_v21 = vadd.f32 %v1043_v19, %v1359_v18  ;;  %v1059_v22 = vpop.f32.mrb[0].mxu1  ;;  %v470_v23 = vpop.f32.mrb[1].mxu0 }
  0xf1   : > { %v686_v24 = vadd.f32 %v1059_v22, %v1359_v18  ;;  %v668_v25 = vadd.f32 %v1359_v18, %v470_v23  ;;  %v534_v26 = vpop.f32.mrb[1].mxu1  ;;  %v1044_v27 = vpop.f32.mrb[2].mxu0 }
  0xf2   : > { %vm702_vm2 = vcmp.gt.f32.partialorder %v670_v21, 0.0  ;;  %v741_v28 = vmul.f32 %v1366_v20, %v670_v21  ;;  %v684_v29 = vadd.f32 %v1359_v18, %v534_v26  ;;  %v671_v30 = vadd.f32 %v1044_v27, %v1359_v18  ;;  %v1060_v31 = vpop.f32.mrb[2].mxu1  ;;  %v473_v32 = vpop.f32.mrb[3].mxu0 }
  0xf3   : > { %vm718_vm3 = vcmp.gt.f32.partialorder %v686_v24, 0.0  ;;  %v757_v33 = vmul.f32 %v1366_v20, %v686_v24  ;;  %vm700_vm4 = vcmp.gt.f32.partialorder %v668_v25, 0.0  ;;  %v739_v34 = vmul.f32 %v1366_v20, %v668_v25  ;;  %v537_v35 = vpop.f32.mrb[3].mxu1 }
  0xf4   : > { %v773_v36 = vsel %vm702_vm2, %v670_v21, %v741_v28  ;;  %vm716_vm5 = vcmp.gt.f32.partialorder %v684_v29, 0.0  ;;  %v755_v37 = vmul.f32 %v1366_v20, %v684_v29  ;;  %vm703_vm6 = vcmp.gt.f32.partialorder %v671_v30, 0.0 }
  0xf5   : > { %805 = vst [vmem:[%s1377_s22 + $0x10] sm:$0xff] %v773_v36  ;;  %v789_v38 = vsel %vm718_vm3, %v686_v24, %v757_v33  ;;  %v771_v39 = vsel %vm700_vm4, %v668_v25, %v739_v34  ;;  %v742_v40 = vmul.f32 %v1366_v20, %v671_v30  ;;  %v687_v41 = vadd.f32 %v1060_v31, %v1359_v18 }
  0xf6   : > { %821 = vst [vmem:[%s1377_s22 + $0x90] sm:$0xff] %v789_v38  ;;  %803 = vst [vmem:[%s1377_s22] sm:$0xff] %v771_v39  ;;  %v787_v42 = vsel %vm716_vm5, %v684_v29, %v755_v37  ;;  %v669_v43 = vadd.f32 %v1359_v18, %v473_v32  ;;  %v685_v44 = vadd.f32 %v1359_v18, %v537_v35 }
  0xf7   : > { %819 = vst [vmem:[%s1377_s22 + $0x80] sm:$0xff] %v787_v42  ;;  %v774_v45 = vsel %vm703_vm6, %v671_v30, %v742_v40  ;;  %vm719_vm7 = vcmp.gt.f32.partialorder %v687_v41, 0.0  ;;  %v758_v46 = vmul.f32 %v1366_v20, %v687_v41  ;;  %v1047_v47 = vpop.f32.mrb[4].mxu0 }
  0xf8   : > { %806 = vst [vmem:[%s1377_s22 + $0x18] sm:$0xff] %v774_v45  ;;  %vm701_vm8 = vcmp.gt.f32.partialorder %v669_v43, 0.0  ;;  %v740_v48 = vmul.f32 %v1366_v20, %v669_v43  ;;  %vm717_vm9 = vcmp.gt.f32.partialorder %v685_v44, 0.0  ;;  %v756_v49 = vmul.f32 %v1366_v20, %v685_v44  ;;  %v1063_v50 = vpop.f32.mrb[4].mxu1  ;;  %v486_v51 = vpop.f32.mrb[5].mxu0 }
  0xf9   : > { %v790_v52 = vsel %vm719_vm7, %v687_v41, %v758_v46  ;;  %v674_v53 = vadd.f32 %v1047_v47, %v1359_v18  ;;  %v690_v54 = vadd.f32 %v1063_v50, %v1359_v18  ;;  %v672_v55 = vadd.f32 %v1359_v18, %v486_v51  ;;  %v550_v56 = vpop.f32.mrb[5].mxu1  ;;  %v1048_v57 = vpop.f32.mrb[6].mxu0 }
  0xfa   : > { %822 = vst [vmem:[%s1377_s22 + $0x98] sm:$0xff] %v790_v52  ;;  %v772_v58 = vsel %vm701_vm8, %v669_v43, %v740_v48  ;;  %v788_v59 = vsel %vm717_vm9, %v685_v44, %v756_v49  ;;  %v688_v60 = vadd.f32 %v1359_v18, %v550_v56  ;;  %v675_v61 = vadd.f32 %v1048_v57, %v1359_v18  ;;  %v1064_v62 = vpop.f32.mrb[6].mxu1  ;;  %v489_v63 = vpop.f32.mrb[7].mxu0 }
  0xfb   : > { %804 = vst [vmem:[%s1377_s22 + $0x8] sm:$0xff] %v772_v58  ;;  %820 = vst [vmem:[%s1377_s22 + $0x88] sm:$0xff] %v788_v59  ;;  %vm706_vm10 = vcmp.gt.f32.partialorder %v674_v53, 0.0  ;;  %v745_v0 = vmul.f32 %v1366_v20, %v674_v53  ;;  %vm722_vm11 = vcmp.gt.f32.partialorder %v690_v54, 0.0  ;;  %v761_v1 = vmul.f32 %v1366_v20, %v690_v54  ;;  %v553_v2 = vpop.f32.mrb[7].mxu1 }
  0xfc   : > { %vm704_vm12 = vcmp.gt.f32.partialorder %v672_v55, 0.0  ;;  %v743_v3 = vmul.f32 %v1366_v20, %v672_v55  ;;  %vm720_vm13 = vcmp.gt.f32.partialorder %v688_v60, 0.0  ;;  %v759_v4 = vmul.f32 %v1366_v20, %v688_v60 }
  0xfd   : > { %v777_v5 = vsel %vm706_vm10, %v674_v53, %v745_v0  ;;  %v793_v6 = vsel %vm722_vm11, %v690_v54, %v761_v1  ;;  %vm707_vm14 = vcmp.gt.f32.partialorder %v675_v61, 0.0  ;;  %v746_v7 = vmul.f32 %v1366_v20, %v675_v61 }
  0xfe   : > { %809 = vst [vmem:[%s1377_s22 + $0x30] sm:$0xff] %v777_v5  ;;  %825 = vst [vmem:[%s1377_s22 + $0xb0] sm:$0xff] %v793_v6  ;;  %v775_v8 = vsel %vm704_vm12, %v672_v55, %v743_v3  ;;  %v791_v9 = vsel %vm720_vm13, %v688_v60, %v759_v4  ;;  %v691_v10 = vadd.f32 %v1064_v62, %v1359_v18 }
  0xff   : > { %v673_v11 = vadd.f32 %v1359_v18, %v489_v63  ;;  %807 = vst [vmem:[%s1377_s22 + $0x20] sm:$0xff] %v775_v8  ;;  %823 = vst [vmem:[%s1377_s22 + $0xa0] sm:$0xff] %v791_v9  ;;  %v778_v12 = vsel %vm707_vm14, %v675_v61, %v746_v7  ;;  %v689_v13 = vadd.f32 %v1359_v18, %v553_v2  ;;  %v1051_v14 = vpop.f32.mrb[8].mxu0 }
 0x100   : > { %810 = vst [vmem:[%s1377_s22 + $0x38] sm:$0xff] %v778_v12  ;;  %vm723_vm15 = vcmp.gt.f32.partialorder %v691_v10, 0.0  ;;  %v762_v15 = vmul.f32 %v1366_v20, %v691_v10  ;;  %v1067_v17 = vpop.f32.mrb[8].mxu1  ;;  %v502_v19 = vpop.f32.mrb[9].mxu0  ;;  %v678_v22 = vadd.f32 %v1051_v14, %v1359_v18 }
 0x101   : > { %vm705_vm0 = vcmp.gt.f32.partialorder %v673_v11, 0.0  ;;  %v744_v16 = vmul.f32 %v1366_v20, %v673_v11  ;;  %vm721_vm1 = vcmp.gt.f32.partialorder %v689_v13, 0.0  ;;  %v760_v21 = vmul.f32 %v1366_v20, %v689_v13  ;;  %v566_v24 = vpop.f32.mrb[9].mxu1  ;;  %v1052_v25 = vpop.f32.mrb[10].mxu0 }
 0x102   : > { %v694_v23 = vadd.f32 %v1067_v17, %v1359_v18  ;;  %v794_v26 = vsel %vm723_vm15, %v691_v10, %v762_v15  ;;  %v676_v28 = vadd.f32 %v1359_v18, %v502_v19  ;;  %v692_v29 = vadd.f32 %v1359_v18, %v566_v24  ;;  %v1068_v30 = vpop.f32.mrb[10].mxu1  ;;  %v505_v31 = vpop.f32.mrb[11].mxu0 }
 0x103   : > { %v776_v27 = vsel %vm705_vm0, %v673_v11, %v744_v16  ;;  %826 = vst [vmem:[%s1377_s22 + $0xb8] sm:$0xff] %v794_v26  ;;  %v792_v32 = vsel %vm721_vm1, %v689_v13, %v760_v21  ;;  %vm710_vm2 = vcmp.gt.f32.partialorder %v678_v22, 0.0  ;;  %v749_v33 = vmul.f32 %v1366_v20, %v678_v22  ;;  %v569_v34 = vpop.f32.mrb[11].mxu1 }
 0x104   : > { %808 = vst [vmem:[%s1377_s22 + $0x28] sm:$0xff] %v776_v27  ;;  %vm726_vm3 = vcmp.gt.f32.partialorder %v694_v23, 0.0  ;;  %824 = vst [vmem:[%s1377_s22 + $0xa8] sm:$0xff] %v792_v32  ;;  %v765_v35 = vmul.f32 %v1366_v20, %v694_v23  ;;  %vm708_vm4 = vcmp.gt.f32.partialorder %v676_v28, 0.0  ;;  %v747_v36 = vmul.f32 %v1366_v20, %v676_v28 }
 0x105   : > { %vm724_vm5 = vcmp.gt.f32.partialorder %v692_v29, 0.0  ;;  %v781_v37 = vsel %vm710_vm2, %v678_v22, %v749_v33  ;;  %v763_v38 = vmul.f32 %v1366_v20, %v692_v29  ;;  %v679_v39 = vadd.f32 %v1052_v25, %v1359_v18 }
 0x106   : > { %v695_v40 = vadd.f32 %v1068_v30, %v1359_v18  ;;  %813 = vst [vmem:[%s1377_s22 + $0x50] sm:$0xff] %v781_v37  ;;  %v797_v41 = vsel %vm726_vm3, %v694_v23, %v765_v35  ;;  %v779_v42 = vsel %vm708_vm4, %v676_v28, %v747_v36  ;;  %v677_v43 = vadd.f32 %v1359_v18, %v505_v31 }
 0x107   : > { %v693_v44 = vadd.f32 %v1359_v18, %v569_v34  ;;  %829 = vst [vmem:[%s1377_s22 + $0xd0] sm:$0xff] %v797_v41  ;;  %811 = vst [vmem:[%s1377_s22 + $0x40] sm:$0xff] %v779_v42  ;;  %v795_v45 = vsel %vm724_vm5, %v692_v29, %v763_v38  ;;  %vm711_vm6 = vcmp.gt.f32.partialorder %v679_v39, 0.0  ;;  %v750_v46 = vmul.f32 %v1366_v20, %v679_v39  ;;  %v1055_v47 = vpop.f32.mrb[12].mxu0 }
 0x108   : > { %vm727_vm7 = vcmp.gt.f32.partialorder %v695_v40, 0.0  ;;  %827 = vst [vmem:[%s1377_s22 + $0xc0] sm:$0xff] %v795_v45  ;;  %v766_v48 = vmul.f32 %v1366_v20, %v695_v40  ;;  %vm709_vm8 = vcmp.gt.f32.partialorder %v677_v43, 0.0  ;;  %v748_v49 = vmul.f32 %v1366_v20, %v677_v43  ;;  %v1071_v50 = vpop.f32.mrb[12].mxu1  ;;  %v518_v51 = vpop.f32.mrb[13].mxu0 }
 0x109   : > { %vm725_vm9 = vcmp.gt.f32.partialorder %v693_v44, 0.0  ;;  %v782_v52 = vsel %vm711_vm6, %v679_v39, %v750_v46  ;;  %v764_v53 = vmul.f32 %v1366_v20, %v693_v44  ;;  %v682_v54 = vadd.f32 %v1055_v47, %v1359_v18  ;;  %v582_v56 = vpop.f32.mrb[13].mxu1  ;;  %v1056_v57 = vpop.f32.mrb[14].mxu0 }
 0x10a   : > { %v698_v55 = vadd.f32 %v1071_v50, %v1359_v18  ;;  %814 = vst [vmem:[%s1377_s22 + $0x58] sm:$0xff] %v782_v52  ;;  %v798_v58 = vsel %vm727_vm7, %v695_v40, %v766_v48  ;;  %v780_v59 = vsel %vm709_vm8, %v677_v43, %v748_v49  ;;  %v680_v60 = vadd.f32 %v1359_v18, %v518_v51  ;;  %v1072_v62 = vpop.f32.mrb[14].mxu1  ;;  %v521_v63 = vpop.f32.mrb[15].mxu0 }
 0x10b   : > { %v696_v61 = vadd.f32 %v1359_v18, %v582_v56  ;;  %830 = vst [vmem:[%s1377_s22 + $0xd8] sm:$0xff] %v798_v58  ;;  %812 = vst [vmem:[%s1377_s22 + $0x48] sm:$0xff] %v780_v59  ;;  %v796_v0 = vsel %vm725_vm9, %v693_v44, %v764_v53  ;;  %vm714_vm10 = vcmp.gt.f32.partialorder %v682_v54, 0.0  ;;  %v753_v1 = vmul.f32 %v1366_v20, %v682_v54  ;;  %v585_v2 = vpop.f32.mrb[15].mxu1 }
 0x10c   : > { %vm730_vm11 = vcmp.gt.f32.partialorder %v698_v55, 0.0  ;;  %828 = vst [vmem:[%s1377_s22 + $0xc8] sm:$0xff] %v796_v0  ;;  %v769_v3 = vmul.f32 %v1366_v20, %v698_v55  ;;  %vm712_vm12 = vcmp.gt.f32.partialorder %v680_v60, 0.0  ;;  %v751_v4 = vmul.f32 %v1366_v20, %v680_v60 }
 0x10d   : > { %vm728_vm13 = vcmp.gt.f32.partialorder %v696_v61, 0.0  ;;  %v785_v5 = vsel %vm714_vm10, %v682_v54, %v753_v1  ;;  %v767_v6 = vmul.f32 %v1366_v20, %v696_v61  ;;  %v683_v7 = vadd.f32 %v1056_v57, %v1359_v18 }
 0x10e   : > { %v699_v8 = vadd.f32 %v1072_v62, %v1359_v18  ;;  %817 = vst [vmem:[%s1377_s22 + $0x70] sm:$0xff] %v785_v5  ;;  %v801_v9 = vsel %vm730_vm11, %v698_v55, %v769_v3  ;;  %v783_v10 = vsel %vm712_vm12, %v680_v60, %v751_v4  ;;  %v681_v11 = vadd.f32 %v1359_v18, %v521_v63 }
 0x10f   : > { %v697_v12 = vadd.f32 %v1359_v18, %v585_v2  ;;  %833 = vst [vmem:[%s1377_s22 + $0xf0] sm:$0xff] %v801_v9  ;;  %815 = vst [vmem:[%s1377_s22 + $0x60] sm:$0xff] %v783_v10  ;;  %v799_v13 = vsel %vm728_vm13, %v696_v61, %v767_v6  ;;  %vm715_vm14 = vcmp.gt.f32.partialorder %v683_v7, 0.0  ;;  %v754_v14 = vmul.f32 %v1366_v20, %v683_v7 }
 0x110   : > { %vm731_vm15 = vcmp.gt.f32.partialorder %v699_v8, 0.0  ;;  %831 = vst [vmem:[%s1377_s22 + $0xe0] sm:$0xff] %v799_v13  ;;  %v770_v15 = vmul.f32 %v1366_v20, %v699_v8  ;;  %vm713_vm0 = vcmp.gt.f32.partialorder %v681_v11, 0.0  ;;  %v752_v18 = vmul.f32 %v1366_v20, %v681_v11 }
 0x111   : > { %vm729_vm1 = vcmp.gt.f32.partialorder %v697_v12, 0.0  ;;  %v786_v16 = vsel %vm715_vm14, %v683_v7, %v754_v14  ;;  %v768_v17 = vmul.f32 %v1366_v20, %v697_v12 }
 0x112   : > { %818 = vst [vmem:[%s1377_s22 + $0x78] sm:$0xff] %v786_v16  ;;  %v802_v19 = vsel %vm731_vm15, %v699_v8, %v770_v15  ;;  %v784_v21 = vsel %vm713_vm0, %v681_v11, %v752_v18 }
 0x113   : > { %834 = vst [vmem:[%s1377_s22 + $0xf8] sm:$0xff] %v802_v19  ;;  %816 = vst [vmem:[%s1377_s22 + $0x68] sm:$0xff] %v784_v21  ;;  %v800_v22 = vsel %vm729_vm1, %v697_v12, %v768_v17 }
 0x114   : > { %832 = vst [vmem:[%s1377_s22 + $0xe8] sm:$0xff] %v800_v22 }
 0x115   : > { %1163 = shalt.err (!%p1160_p5)
}
 0x116   : > { %s1164_s10 = scalar_lea.hbm %s1469_s30, 4096  ;;  %s1168_s13 = scalar_lea.hbm %s1529_s4, 8192 }
 0x117   : > { %p1165_p6 = scmp.ne.s32.totalorder %s1469_s30, %s1164_s10  ;;  %p1169_p10 = scmp.lt.u32.totalorder %s1469_s30, %s1529_s4 }
 0x118   : > { %p1170_p11 = scmp.lt.u32.totalorder %s1168_s13, %s1164_s10  ;;  %p1172_p13 = scmp.lt.u32.totalorder %s1164_s10, %s1469_s30 }
 0x119   : > { %p1166_p7 = pnand %p1165_p6, %p1298_p4 }
 0x11a   : > { %p1171_p12 = por %p1170_p11, %p1169_p10 }
 0x11b   : > { %p1167_p9 = pneg %p1166_p7 }
 0x11c   : > { %p1173_p0 = por %p1172_p13, %p1171_p12 }
 0x11e   : > { %p1174_p1 = pnand %p1173_p0, %p1167_p9 }
 0x120   : > { %1177 = shalt.err (!%p1174_p1)
}
 0x121   : > { %s1231_s22 = smov 128   ;;  %s1232_s24 = smov 8  }
 0x122   : > { %1077 = dma.vmem_to_hbm [thread:$0]  (%p1298_p4), %s1471_s26, 4096, %s1469_s30, %s1479_s5, %s1231_s22, %s1231_s22, %s1232_s24  }
 0x123 PF: > { %p1083_p2 = scmp.ge.s32.totalorder %s1228_s20, 2  ;;  %s867_s18 = sand.u32 1, %s1208_s15  }
 0x124   : > { %s868_s29 = scalar_lea.sflag [#allocation4], %s867_s18 }
 0x125   : > { %p1080_p3 = pnand %p1083_p2, %p1305_p8 }
 0x127   : > { %1203 = dma.done.wait (!%p1080_p3), %s868_s29, 4096  }
 0x128   : > { %1205 = vsyncadd (!%p1080_p3), %s868_s29, 4294963200  ;;  %s17_s20 = sadd.s32 1, %s1228_s20   ;;  %s1532_s15 = smov %s1212_s16 }
 0x129   : > { %p14_p5 = scmp.ge.s32.totalorder %s17_s20, 4   ;;  %s1533_s16 = smov %s1216_s17 }
 0x12a   : > { %s1534_s17 = smov %s1311_s28  ;;  %s1535_s18 = smov %s1224_s19 }
 0x12b   : > { %s1536_s19 = smov %s1538_s23  ;;  %16 = sbr.rel (!%p14_p5) target bundleno = 4 (0x4), region = 81 }
 0x132   :  { %873 = vsyncpa [#allocation4], 1 }
 0x133   :  { %875 = vsyncpa [#allocation4 + $0x1], 1 }

</bundles_post_ra>
